<compile_context>
chip_gen: v5e
topology: v5e:2x2
jax: 0.10.0
libtpu: 0.0.40
codegen_flags: <defaults>
</compile_context>

<pallas_src>
import jax
import jax.numpy as jnp
from jax.experimental import pallas as pl
from jax.experimental.pallas import tpu as pltpu

_LANE = 128
_SUBLANE = 8
_NEG_LARGE = -1e30  # finite "-inf" for padded bias lanes (safe before exp)


def _round_up(x, m):
    return (x + m - 1) // m * m


def _vmem_capacity_bytes():
    try:
        return int(pltpu.get_tpu_info().vmem_capacity_bytes)
    except Exception:  # interpret mode / older runtimes
        return 64 * 1024 * 1024  # conservative: v7x per-TC VMEM


# ----------------------------------------------------------------------------
# Kernel: affine projection (MXU) + row-wise softmax (EUP/XLU epilogue).
# ----------------------------------------------------------------------------
def _output_transform_kernel(x_ref, w_ref, b_ref, o_ref):
    # per_batch_transform: x @ W + b.  x arrives in its original dtype (no
    # wrapper-side cast pass); cast to bf16 in VMEM right before the MXU.
    x = x_ref[...].astype(jnp.bfloat16)
    y = jnp.dot(x, w_ref[...], preferred_element_type=jnp.float32)
    y = y + b_ref[...]  # (1, D_out_p) f32 bias broadcasts over rows

    # uncollate -> per-sample softmax -> stack == batched row softmax (f32).
    m = jnp.max(y, axis=-1, keepdims=True)          # XLU reduce
    e = jnp.exp(y - m)                              # EUP
    denom = jnp.sum(e, axis=-1, keepdims=True)      # XLU reduce
    # approx reciprocal runs on the free EUP slot; rows sum to 1 within ~1e-3.
    o_ref[...] = (e * pl.reciprocal(denom, approx=True)).astype(o_ref.dtype)


# ----------------------------------------------------------------------------
# One-time weight preparation (hoisted out of the per-forward path).
# ----------------------------------------------------------------------------
def prepare_output_transform_params(w, b):
    """Pad D_out to a 128-lane multiple and cast W to bf16, once.

    Zero weight columns + -1e30 bias in the padded lanes give exp(...) == 0, so
    valid softmax values are unchanged while output stores stay lane-dense.
    """
    d_in, d_out = w.shape
    d_out_p = _round_up(d_out, _LANE)
    w_p = jnp.pad(w, ((0, 0), (0, d_out_p - d_out))).astype(jnp.bfloat16)
    b_p = jnp.pad(b.astype(jnp.float32), (0, d_out_p - d_out),
                  constant_values=_NEG_LARGE).reshape(1, d_out_p)
    return w_p, b_p, d_out


# ----------------------------------------------------------------------------
# Tiling heuristics.
# ----------------------------------------------------------------------------
def _choose_tm(batch_size, d_in, d_out_p, x_bytes, out_bytes, budget_bytes):
    """Largest row tile (<=1024, 128-multiples when big, else 8-multiples)
    whose double-buffered x/out tiles plus the single-buffered resident W/b
    fit within the VMEM budget; split to >=2 grid steps for megacore."""
    b8 = _round_up(batch_size, _SUBLANE)
    tm = min(1024, b8)
    if tm > _LANE:
        tm = (tm // _LANE) * _LANE  # MXU-friendly 128-aligned M tiles
    resident = d_in * d_out_p * 2 + d_out_p * 4  # single-buffered bf16 W + f32 b
    while tm > _SUBLANE:
        foot = 2 * tm * (d_in * x_bytes + d_out_p * out_bytes) + resident
        if foot <= budget_bytes:
            break
        tm = max(_SUBLANE, _round_up(tm // 2, _SUBLANE))
    tm = max(tm, _SUBLANE)
    # Ensure >=2 grid steps when possible so v7x's second TensorCore gets work.
    if tm >= batch_size and batch_size > _SUBLANE:
        tm = _round_up((batch_size + 1) // 2, _SUBLANE)
    return tm


def _run_pallas(x, w_p, b_p, *, tm, b_pad, d_in, d_out_p, out_dtype,
                vmem_limit, resident_mode):
    resident_kwargs = {} if resident_mode is None else {"pipeline_mode": resident_mode}
    return pl.pallas_call(
        _output_transform_kernel,
        out_shape=jax.ShapeDtypeStruct((b_pad, d_out_p), out_dtype),
        grid_spec=pl.GridSpec(
            grid=(b_pad // tm,),
            in_specs=[
                # Pipelined row tile (double-buffered by default).
                pl.BlockSpec((tm, d_in), lambda i: (i, 0)),
                # Resident weight / bias: constant index_map, single-buffered.
                pl.BlockSpec((d_in, d_out_p), lambda i: (0, 0), **resident_kwargs),
                pl.BlockSpec((1, d_out_p), lambda i: (0, 0), **resident_kwargs),
            ],
            out_specs=pl.BlockSpec((tm, d_out_p), lambda i: (i, 0)),
        ),
        compiler_params=pltpu.CompilerParams(
            dimension_semantics=("parallel",),  # independent row tiles -> both TCs
            vmem_limit_bytes=vmem_limit,        # generation-aware scoped limit
        ),
    )(x, w_p, b_p)


# ----------------------------------------------------------------------------
# Forward: mirrors _OutputTransformProcessor.forward for tensor batches.
# ----------------------------------------------------------------------------
def output_transform_processor(batch, params):
    if batch is None:  # `if batch is None: return batch`
        return batch
    # TODO(synk): non-tensor batches (lists / dicts of samples), the
    # convert_to_modules wrapping and the optional `output` callable are
    # Python-level dispatch with no Pallas equivalent.

    w_p, b_p, d_out = params
    B, d_in = batch.shape
    d_out_p = w_p.shape[1]
    out_dtype = batch.dtype
    x_bytes = jnp.dtype(batch.dtype).itemsize
    out_bytes = jnp.dtype(out_dtype).itemsize

    # VMEM limit scaled to this generation (v5e/v6e: 128 MiB phys -> 96 MiB;
    # v7x: 64 MiB phys -> 48 MiB); tiling budget is 0.75x the limit.
    vmem_cap = _vmem_capacity_bytes()
    vmem_limit = min((vmem_cap * 3) // 4, 96 * 1024 * 1024)
    budget = (vmem_limit * 3) // 4

    # Resident-weight guard (matters on v7x's 64 MiB VMEM).
    if d_in * d_out_p * 2 > budget // 2:
        # TODO(synk): N-tiled two-pass / online-softmax fallback for weights
        # too large to keep resident in VMEM.
        raise ValueError("per_batch_transform weight too large to keep resident in VMEM")

    tm = _choose_tm(B, d_in, d_out_p, x_bytes, out_bytes, budget)
    b_pad = _round_up(B, tm)

    # Only touch x in the wrapper when the batch is ragged w.r.t. the tile.
    # Padded rows produce softmax(bias) and are sliced off (no NaNs possible).
    x = batch if b_pad == B else jnp.pad(batch, ((0, b_pad - B), (0, 0)))

    common = dict(tm=tm, b_pad=b_pad, d_in=d_in, d_out_p=d_out_p,
                  out_dtype=out_dtype, vmem_limit=vmem_limit)
    try:
        out = _run_pallas(x, w_p, b_p, resident_mode=pl.Buffered(1), **common)
    except Exception:
        # Fallback for runtimes that reject single-buffered resident inputs.
        out = _run_pallas(x, w_p, b_p, resident_mode=None, **common)

    if b_pad != B or d_out_p != d_out:
        out = out[:B, :d_out]
    return out


if __name__ == "__main__":
    key = jax.random.PRNGKey(0)
    kx, kw, kb, kx2, kw2, kb2 = jax.random.split(key, 6)

    # --- aligned small shapes: no x pad, no output slice, 2 grid steps -------
    B, D_IN, D_OUT = 16, 32, 128
    x = jax.random.normal(kx, (B, D_IN), dtype=jnp.float32)
    w = jax.random.normal(kw, (D_IN, D_OUT), dtype=jnp.float32) * 0.1
    b = jax.random.normal(kb, (D_OUT,), dtype=jnp.float32) * 0.1

    params = prepare_output_transform_params(w, b)   # hoisted weight prep
    out = jax.block_until_ready(output_transform_processor(x, params))

    # Pure-JAX f32 reference of the module's forward semantics:
    # uncollate -> per-sample softmax -> stack == batched row softmax.
    ref = jax.nn.softmax(x @ w + b, axis=-1)
    assert out.shape == (B, D_OUT)
    # bf16 matmul operands + approx reciprocal -> looser tolerance than f32.
    assert jnp.allclose(out, ref, atol=2e-2, rtol=2e-2), float(
        jnp.max(jnp.abs(out - ref)))

    # --- ragged check: exercises batch / D_out padding + slice paths ---------
    B2, D_IN2, D_OUT2 = 5, 24, 96
    x2 = jax.random.normal(kx2, (B2, D_IN2), dtype=jnp.float32)
    w2 = jax.random.normal(kw2, (D_IN2, D_OUT2), dtype=jnp.float32) * 0.1
    b2 = jax.random.normal(kb2, (D_OUT2,), dtype=jnp.float32) * 0.1

    params2 = prepare_output_transform_params(w2, b2)
    out2 = jax.block_until_ready(output_transform_processor(x2, params2))
    ref2 = jax.nn.softmax(x2 @ w2 + b2, axis=-1)
    assert out2.shape == (B2, D_OUT2)
    assert jnp.allclose(out2, ref2, atol=2e-2, rtol=2e-2), float(
        jnp.max(jnp.abs(out2 - ref2)))

    # --- `batch is None` path -------------------------------------------------
    assert output_transform_processor(None, params) is None

    print("KERNEL_OK")
</pallas_src>

<mosaic_0001>
module attributes {stable_mosaic.version = 11 : i64} {
  func.func @_output_transform_kernel(%arg0: i32, %arg1: memref<8x32xf32, #tpu.memory_space<vmem>>, %arg2: memref<32x128xbf16, #tpu.memory_space<vmem>>, %arg3: memref<1x128xf32, #tpu.memory_space<vmem>>, %arg4: memref<8x128xf32, #tpu.memory_space<vmem>>) attributes {dimension_semantics = [#tpu.dimension_semantics<parallel>], iteration_bounds = array<i64: 2>, scalar_prefetch = 0 : i64, scratch_operands = 0 : i64, tpu.core_type = #tpu.core_type<tc>, window_params = [{transform_indices = @transform_0, window_bounds = array<i64: 8, 32>}, {pipeline_mode = #tpu.pipeline_mode<synchronous>, transform_indices = @transform_1, window_bounds = array<i64: 32, 128>}, {pipeline_mode = #tpu.pipeline_mode<synchronous>, transform_indices = @transform_2, window_bounds = array<i64: 1, 128>}, {transform_indices = @transform_3, window_bounds = array<i64: 8, 128>}]} {
    %c0 = arith.constant 0 : index
    %c0_0 = arith.constant 0 : index
    %0 = vector.load %arg1[%c0, %c0_0] : memref<8x32xf32, #tpu.memory_space<vmem>>, vector<8x32xf32>
    %1 = arith.truncf %0 : vector<8x32xf32> to vector<8x32xbf16>
    %c0_1 = arith.constant 0 : index
    %c0_2 = arith.constant 0 : index
    %2 = vector.load %arg2[%c0_1, %c0_2] : memref<32x128xbf16, #tpu.memory_space<vmem>>, vector<32x128xbf16>
    %cst = arith.constant dense<0.000000e+00> : vector<8x128xf32>
    %3 = tpu.matmul %1, %2, %cst {dimension_numbers = #tpu.dot_dimension_numbers<[1], [0], [0], [1], [0, 0, 1, 1], [], []>} : vector<8x32xbf16>, vector<32x128xbf16>, vector<8x128xf32> -> vector<8x128xf32>
    %c0_3 = arith.constant 0 : index
    %c0_4 = arith.constant 0 : index
    %4 = vector.load %arg3[%c0_3, %c0_4] : memref<1x128xf32, #tpu.memory_space<vmem>>, vector<1x128xf32>
    %5 = vector.broadcast %4 : vector<1x128xf32> to vector<8x128xf32>
    %6 = arith.addf %3, %5 : vector<8x128xf32>
    %cst_5 = arith.constant dense<0xFF800000> : vector<8xf32>
    %7 = vector.multi_reduction <maximumf>, %6, %cst_5 [1] : vector<8x128xf32> to vector<8xf32>
    %8 = vector.shape_cast %7 : vector<8xf32> to vector<8x1xf32>
    %9 = vector.broadcast %8 : vector<8x1xf32> to vector<8x128xf32>
    %10 = arith.subf %6, %9 : vector<8x128xf32>
    %11 = math.exp %10 : vector<8x128xf32>
    %cst_6 = arith.constant dense<0.000000e+00> : vector<8xf32>
    %12 = vector.multi_reduction <add>, %11, %cst_6 [1] : vector<8x128xf32> to vector<8xf32>
    %13 = vector.shape_cast %12 : vector<8xf32> to vector<8x1xf32>
    %14 = tpu.reciprocal %13 {approx = true} : vector<8x1xf32> -> vector<8x1xf32>
    %15 = vector.broadcast %14 : vector<8x1xf32> to vector<8x128xf32>
    %16 = arith.mulf %11, %15 : vector<8x128xf32>
    %c0_7 = arith.constant 0 : index
    %c0_8 = arith.constant 0 : index
    %17 = vector.load %arg4[%c0_7, %c0_8] : memref<8x128xf32, #tpu.memory_space<vmem>>, vector<8x128xf32>
    tpu.vector_store %arg4[%c0_7, %c0_8], %16 {strides = array<i32>} : memref<8x128xf32, #tpu.memory_space<vmem>>, vector<8x128xf32>,
    return
  }
  func.func @transform_0(%arg0: i32) -> (i32, i32) {
    %c0_i32 = arith.constant 0 : i32
    %c0_i32_0 = arith.constant 0 : i32
    return %arg0, %c0_i32 : i32, i32
  }
  func.func @transform_1(%arg0: i32) -> (i32, i32) {
    %c0_i32 = arith.constant 0 : i32
    %c0_i32_0 = arith.constant 0 : i32
    %c0_i32_1 = arith.constant 0 : i32
    return %c0_i32, %c0_i32_0 : i32, i32
  }
  func.func @transform_2(%arg0: i32) -> (i32, i32) {
    %c0_i32 = arith.constant 0 : i32
    %c0_i32_0 = arith.constant 0 : i32
    %c0_i32_1 = arith.constant 0 : i32
    return %c0_i32, %c0_i32_0 : i32, i32
  }
  func.func @transform_3(%arg0: i32) -> (i32, i32) {
    %c0_i32 = arith.constant 0 : i32
    %c0_i32_0 = arith.constant 0 : i32
    return %arg0, %c0_i32 : i32, i32
  }
}

module attributes {stable_mosaic.version = 11 : i64} {
  func.func @_output_transform_kernel(%arg0: i32, %arg1: memref<8x32xf32, #tpu.memory_space<vmem>>, %arg2: memref<32x128xbf16, #tpu.memory_space<vmem>>, %arg3: memref<1x128xf32, #tpu.memory_space<vmem>>, %arg4: memref<8x128xf32, #tpu.memory_space<vmem>>) attributes {dimension_semantics = [#tpu.dimension_semantics<parallel>], iteration_bounds = array<i64: 2>, scalar_prefetch = 0 : i64, scratch_operands = 0 : i64, tpu.core_type = #tpu.core_type<tc>, window_params = [{transform_indices = @transform_0, window_bounds = array<i64: 8, 32>}, {pipeline_mode = #tpu.pipeline_mode<synchronous>, transform_indices = @transform_1, window_bounds = array<i64: 32, 128>}, {pipeline_mode = #tpu.pipeline_mode<synchronous>, transform_indices = @transform_2, window_bounds = array<i64: 1, 128>}, {transform_indices = @transform_3, window_bounds = array<i64: 8, 128>}]} {
    %c0 = arith.constant 0 : index
    %c0_0 = arith.constant 0 : index
    %0 = vector.load %arg1[%c0, %c0_0] : memref<8x32xf32, #tpu.memory_space<vmem>>, vector<8x32xf32>
    %1 = arith.truncf %0 : vector<8x32xf32> to vector<8x32xbf16>
    %c0_1 = arith.constant 0 : index
    %c0_2 = arith.constant 0 : index
    %2 = vector.load %arg2[%c0_1, %c0_2] : memref<32x128xbf16, #tpu.memory_space<vmem>>, vector<32x128xbf16>
    %cst = arith.constant dense<0.000000e+00> : vector<8x128xf32>
    %3 = tpu.matmul %1, %2, %cst {dimension_numbers = #tpu.dot_dimension_numbers<[1], [0], [0], [1], [0, 0, 1, 1], [], []>} : vector<8x32xbf16>, vector<32x128xbf16>, vector<8x128xf32> -> vector<8x128xf32>
    %c0_3 = arith.constant 0 : index
    %c0_4 = arith.constant 0 : index
    %4 = vector.load %arg3[%c0_3, %c0_4] : memref<1x128xf32, #tpu.memory_space<vmem>>, vector<1x128xf32>
    %5 = vector.broadcast %4 : vector<1x128xf32> to vector<8x128xf32>
    %6 = arith.addf %3, %5 : vector<8x128xf32>
    %cst_5 = arith.constant dense<0xFF800000> : vector<8xf32>
    %7 = vector.multi_reduction <maximumf>, %6, %cst_5 [1] : vector<8x128xf32> to vector<8xf32>
    %8 = vector.shape_cast %7 : vector<8xf32> to vector<8x1xf32>
    %9 = vector.broadcast %8 : vector<8x1xf32> to vector<8x128xf32>
    %10 = arith.subf %6, %9 : vector<8x128xf32>
    %11 = math.exp %10 : vector<8x128xf32>
    %cst_6 = arith.constant dense<0.000000e+00> : vector<8xf32>
    %12 = vector.multi_reduction <add>, %11, %cst_6 [1] : vector<8x128xf32> to vector<8xf32>
    %13 = vector.shape_cast %12 : vector<8xf32> to vector<8x1xf32>
    %14 = tpu.reciprocal %13 {approx = true} : vector<8x1xf32> -> vector<8x1xf32>
    %15 = vector.broadcast %14 : vector<8x1xf32> to vector<8x128xf32>
    %16 = arith.mulf %11, %15 : vector<8x128xf32>
    %c0_7 = arith.constant 0 : index
    %c0_8 = arith.constant 0 : index
    %17 = vector.load %arg4[%c0_7, %c0_8] : memref<8x128xf32, #tpu.memory_space<vmem>>, vector<8x128xf32>
    tpu.vector_store %arg4[%c0_7, %c0_8], %16 {strides = array<i32>} : memref<8x128xf32, #tpu.memory_space<vmem>>, vector<8x128xf32>,
    return
  }
  func.func @transform_0(%arg0: i32) -> (i32, i32) {
    %c0_i32 = arith.constant 0 : i32
    %c0_i32_0 = arith.constant 0 : i32
    return %arg0, %c0_i32 : i32, i32
  }
  func.func @transform_1(%arg0: i32) -> (i32, i32) {
    %c0_i32 = arith.constant 0 : i32
    %c0_i32_0 = arith.constant 0 : i32
    %c0_i32_1 = arith.constant 0 : i32
    return %c0_i32, %c0_i32_0 : i32, i32
  }
  func.func @transform_2(%arg0: i32) -> (i32, i32) {
    %c0_i32 = arith.constant 0 : i32
    %c0_i32_0 = arith.constant 0 : i32
    %c0_i32_1 = arith.constant 0 : i32
    return %c0_i32, %c0_i32_0 : i32, i32
  }
  func.func @transform_3(%arg0: i32) -> (i32, i32) {
    %c0_i32 = arith.constant 0 : i32
    %c0_i32_0 = arith.constant 0 : i32
    return %arg0, %c0_i32 : i32, i32
  }
}

</mosaic_0001>

<bundles_post_ra>
// kernel: tpu_custom_call.1
= control target key start
LH: loop header
LB: loop body
LE: loop exit
PB: predicated region body
PF: predicated region fallthrough
CT: control target
= control target key end

     0   :  { %8 = vsyncpa [#allocation3], 0  ;;  %s738_s0 = inlined_call_operand.hbm [shape: f32[16,32], index: 0, kind: input, shape index: {}]   ;;  %s739_s1 = inlined_call_operand.hbm [shape: bf16[32,128], index: 1, kind: input, shape index: {}]   ;;  %s740_s2 = inlined_call_operand.vmem [shape: f32[1,128], index: 2, kind: input, shape index: {}]   ;;  %s741_s3 = inlined_call_operand.hbm [shape: f32[16,128], index: 3, kind: output, shape index: {}]  }
   0x1   :  { %10 = vsyncpa [#allocation3 + $0x1], 0 }
   0x2   :  { %11 = vsyncpa [#allocation6], 0 }
   0x3   :  { %12 = vsyncpa [#allocation4], 0 }
   0x4   :  { %14 = vsyncpa [#allocation4 + $0x1], 0  ;;  %s595_s12 = smov 0   ;;  %s597_s13 = smov 0  }
   0x5   :  { %s599_s14 = smov 0   ;;  %s601_s15 = smov 0  }
   0x6 LB: > { %s130_s18 = sshll.u32 %s739_s1, 4  ;;  %s619_s19 = sadd.s32 4294967295, %s570_s15   ;;  %s570_s15 = sphi %s601_s15, %s751_s15   ;;  %s566_s14 = sphi %s599_s14, %s750_s14   ;;  %s562_s13 = sphi %s597_s13, %s749_s13   ;;  %s558_s12 = sphi %s595_s12, %s748_s12   ;;  %s131_s18 = int_to_ptr.hbm [resolvable:$true] %s130_s18 }
   0x7   : > { %p352_p0 = scmp.ge.s32.totalorder %s570_s15, 1  ;;  %p41_p1 = scmp.eq.s32.totalorder %s619_s19, 0 }
   0x8   : > { %p119_p2 = scmp.lt.s32.totalorder %s570_s15, 3  ;;  %s572_s21 = smov [#allocation5]  }
   0x9   : > { %s132_s22 = sshll.u32 %s572_s21, 4  ;;  %s573_s23 = smov 64   ;;  %s133_s22 = int_to_ptr.vmem [resolvable:$true] %s132_s22 }
   0xa   : > { %p624_p3 = pnand %p352_p0, %p119_p2  ;;  %s574_s24 = smov 4  }
   0xb   : > { %s351_s25 = sadd.s32 4294967294, %s570_s15   ;;  %s635_s26 = sadd.s32 1, %s570_s15  }
   0xc   : > { %p384_p4 = pneg %p624_p3  ;;  %s27_s27 = sadd.s32 1, %s566_s14 }
   0xd   : > { %s24_s28 = ssub.s32 %s570_s15, %s635_s26  ;;  %p34_p7 = scmp.ne.s32.totalorder %s566_s14, %s562_s13 }
   0xe   : > { %p385_p6 = pnand %p384_p4, %p41_p1  ;;  %p25_p8 = scmp.eq.s32.totalorder %s24_s28, 0 }
   0xf   : > { %p35_p9 = scmp.eq.s32.totalorder %s570_s15, 0  ;;  %p40_p10 = scmp.ne.s32.totalorder %s562_s13, %s558_s12 }
  0x10   : > { %387 = dma.hbm_to_vmem [thread:$0]  (!%p385_p6), %s131_s18, 256, %s133_s22, [#allocation6], %s573_s23, %s573_s23, %s574_s24  }
  0x11   : > { %p106_p11 = scmp.eq.s32.totalorder %s619_s19, 1  ;;  %p651_p12 = por %p41_p1, %p40_p10 }
  0x12   : > { %s647_s29 = scalar_select %p25_p8, %s566_s14, %s27_s27  }
  0x13   : > { %p655_p13 = por %p106_p11, %p34_p7  ;;  %p112_p0 = scmp.eq.s32.totalorder %s351_s25, 1 }
  0x14   : > { %p36_p2 = por %p35_p9, %p34_p7  ;;  %s149_s5 = sand.u32 1, %s566_s14  }
  0x15   : > { %p660_p4 = por %p112_p0, %p40_p10  ;;  %p397_p6 = scmp.lt.s32.totalorder %s570_s15, 2 }
  0x16   : > { %s355_s7 = sshll.u32 %s149_s5, 3  ;;  %s356_s8 = sshll.u32 %s570_s15, 3 }
  0x17   : > { %s157_s11 = scalar_lea.hbm %s738_s0, %s356_s8  ;;  %s153_s17 = scalar_lea.vmem [#allocation2], %s355_s7 }
  0x18   : > { %s159_s16 = sshll.u32 %s157_s11, 4  ;;  %s161_s18 = sshll.u32 %s153_s17, 4  ;;  %s160_s16 = int_to_ptr.hbm [resolvable:$true] %s159_s16  ;;  %s162_s18 = int_to_ptr.vmem [resolvable:$true] %s161_s18 }
  0x19   : > { %p669_p8 = pnand %p397_p6, %p36_p2  ;;  %s150_s22 = scalar_lea.sflag [#allocation3], %s149_s5 }
  0x1a   : > { %s470_s23 = sshra.s32 %s160_s16, 4  ;;  %s477_s28 = scalar_lea.hbm %s738_s0, 16  ;;  %s471_s23 = int_to_ptr.hbm [resolvable:$true] %s470_s23 }
  0x1b   : > { %s472_s24 = scalar_lea.hbm %s471_s23, 8  ;;  %p474_p9 = pneg %p669_p8 }
  0x1c   : > { %p473_p7 = scmp.ne.s32.totalorder %s471_s23, %s472_s24  ;;  %p478_p0 = scmp.lt.s32.totalorder %s471_s23, %s738_s0 }
  0x1d   : > { %p479_p2 = scmp.lt.s32.totalorder %s477_s28, %s472_s24 }
  0x1e   : > { %p475_p10 = pnand %p474_p9, %p473_p7 }
  0x1f   : > { %p480_p6 = por %p479_p2, %p478_p0 }
  0x20   : > { %p476_p11 = pneg %p475_p10 }
  0x22   : > { %p481_p5 = pnand %p480_p6, %p476_p11 }
  0x24   : > { %484 = shalt.err (!%p481_p5)
}
  0x25   : > { %391 = dma.hbm_to_vmem [thread:$0]  (!%p669_p8), %s160_s16, 128, %s162_s18, %s150_s22  }
  0x26   : > { %170 = sbr.rel (%p624_p3) target bundleno = 437 (0x1b5), region = 32  ;;  %s686_s5 = sand.u32 (!%p624_p3), 1, %s562_s13  }
  0x27   : > { %s358_s9 = sshll.u32 (!%p624_p3), %s686_s5, 3  ;;  %s173_s10 = scalar_lea.sflag (!%p624_p3), [#allocation3], %s686_s5 }
  0x28   : > { %s176_s11 = scalar_lea.vmem (!%p624_p3), [#allocation2], %s358_s9 }
  0x2b   : > { %545 = dma.done.wait (%p651_p12), %s173_s10, 128  }
  0x2c   : > { %547 = vsyncadd (%p651_p12), %s173_s10, 4294967168 }
  0x2d   : > { %549 = dma.done.wait (%p41_p1), [#allocation6], 256  }
  0x2e   : > { %551 = vsyncadd (%p41_p1), [#allocation6], 4294967040  ;;  %v375_v0 = vld [vmem:[#allocation5 + $0x8] sm:$0xff]  ;;  %v374_v1 = vld [vmem:[#allocation5] sm:$0xff]  ;;  %vm228_vm0 = vcmask 261120   ;;  %s371_s30 = sshll.u32 %s619_s19, 3 }
  0x2f   : > { %238 = vmatpush.bf16.msra.mxu0 %v375_v0  ;;  %v206_v2 = vld [vmem:[%s176_s11] sm:$0xff]  ;;  %s266_s21 = scalar_lea.hbm %s741_s3, %s371_s30  ;;  %s204_s22 = scalar_lea.vmem [#allocation7], %s358_s9 }
  0x30   : > { %v207_v3 = vpack.c.bf16 %v206_v2, %v206_v2  ;;  %v435_v4 = vld [vmem:[%s740_s2] ss:$0 sm:$0xff]  ;;  %s268_s23 = sshll.u32 %s204_s22, 4  ;;  %s270_s24 = sshll.u32 %s266_s21, 4  ;;  %s269_s23 = int_to_ptr.vmem [resolvable:$true] %s268_s23  ;;  %s271_s24 = int_to_ptr.hbm [resolvable:$true] %s270_s24 }
  0x31   : > { %s256_s25 = scalar_lea.sflag [#allocation4], %s686_s5  ;;  %s514_s27 = sshra.s32 %s271_s24, 4  ;;  %s515_s27 = int_to_ptr.hbm [resolvable:$true] %s514_s27 }
  0x32   : > { %s516_s19 = scalar_lea.hbm %s515_s27, 8  ;;  %s520_s8 = scalar_lea.hbm %s741_s3, 16 }
  0x33   : > { %239 = vmatpush.bf16.msra.mxu0 %v374_v1  ;;  %p517_p1 = scmp.ne.s32.totalorder %s515_s27, %s516_s19  ;;  %p521_p12 = scmp.lt.s32.totalorder %s515_s27, %s741_s3 }
  0x34   : > { %p522_p8 = scmp.lt.s32.totalorder %s520_s8, %s516_s19 }
  0x35   : > { %p518_p3 = pnand %p517_p1, %p655_p13 }
  0x36   : > { %369 = vmatmul.msk.bf16.vlgmr.msra.gmra.mxu0 %vm228_vm0, %v207_v3  ;;  %p523_p7 = por %p522_p8, %p521_p12 }
  0x37   : > { %p519_p5 = pneg %p518_p3 }
  0x39   : > { %p524_p9 = pnand %p523_p7, %p519_p5 }
  0xb3   : > { %v241_v5 = vpop.f32.mrf.mxu0 }
  0xb4   : > { %v242_v6 = vadd.f32 %v435_v4, %v241_v5 }
  0xb6   : > { %245 = vmax.xlane.f32.xlu0 %v242_v6 }
  0xbb   : > { %v243_v7 = vpop.f32.mrf.mxu0 }
 0x129   : > { %v246_v8 = vpop.xlane.xlu0 %245 }
 0x12a   : > { %v247_v9 = vsub.f32 %v242_v6, %v246_v8 }
 0x12c   : > { %v248_v10 = vmul.f32 1.442695, %v247_v9 }
 0x12e   : > { %436 = vpow2.f32 %v248_v10 }
 0x134   : > { %v437_v11 = vpop.eup %436 }
 0x135   : > { %250 = vadd.xlane.f32.xlu0 %v437_v11 }
 0x1a8   : > { %v251_v12 = vpop.xlane.xlu0 %250 }
 0x1a9   : > { %438 = vrcp.f32 %v251_v12 }
 0x1af   : > { %v439_v13 = vpop.eup %438 }
 0x1b0   : > { %v253_v14 = vmul.f32 %v439_v13, %v437_v11 }
 0x1b2   : > { %254 = vst [vmem:[%s204_s22] sm:$0xff] %v253_v14 }
 0x1b3   : > { %527 = shalt.err (!%p524_p9)
}
 0x1b4   : > { %382 = dma.vmem_to_hbm [thread:$0]  (%p655_p13), %s269_s23, 128, %s271_s24, %s256_s25  }
 0x1b5 PF: > { %s282_s5 = sand.u32 1, %s558_s12   ;;  %p747_p10 = scmp.ge.s32.totalorder %s570_s15, 2 }
 0x1b6   : > { %s283_s11 = scalar_lea.sflag [#allocation4], %s282_s5 }
 0x1b7   : > { %p393_p11 = pnand %p747_p10, %p660_p4 }
 0x1b9   : > { %p394_p0 = pneg %p393_p11 }
 0x1bb   : > { %553 = dma.done.wait (%p394_p0), %s283_s11, 128  }
 0x1bc   : > { %555 = vsyncadd (%p394_p0), %s283_s11, 4294967168  ;;  %p17_p2 = scmp.ge.s32.totalorder %s635_s26, 4   ;;  %s748_s12 = smov %s562_s13 }
 0x1bd   : > { %s749_s13 = smov %s566_s14  ;;  %s750_s14 = smov %s647_s29 }
 0x1be   : > { %s751_s15 = smov %s635_s26  ;;  %19 = sbr.rel (!%p17_p2) target bundleno = 6 (0x6), region = 81 }
 0x1c3   :  { %289 = vsyncpa [#allocation3], 1 }
 0x1c4   :  { %291 = vsyncpa [#allocation3 + $0x1], 1 }
 0x1c5   :  { %292 = vsyncpa [#allocation6], 1 }
 0x1c6   :  { %293 = vsyncpa [#allocation4], 1 }
 0x1c7   :  { %295 = vsyncpa [#allocation4 + $0x1], 1 }

// kernel: tpu_custom_call.1
= control target key start
LH: loop header
LB: loop body
LE: loop exit
PB: predicated region body
PF: predicated region fallthrough
CT: control target
= control target key end

     0   :  { %8 = vsyncpa [#allocation3], 0  ;;  %s738_s0 = inlined_call_operand.hbm [shape: f32[16,32], index: 0, kind: input, shape index: {}]   ;;  %s739_s1 = inlined_call_operand.hbm [shape: bf16[32,128], index: 1, kind: input, shape index: {}]   ;;  %s740_s2 = inlined_call_operand.vmem [shape: f32[1,128], index: 2, kind: input, shape index: {}]   ;;  %s741_s3 = inlined_call_operand.hbm [shape: f32[16,128], index: 3, kind: output, shape index: {}]  }
   0x1   :  { %10 = vsyncpa [#allocation3 + $0x1], 0 }
   0x2   :  { %11 = vsyncpa [#allocation6], 0 }
   0x3   :  { %12 = vsyncpa [#allocation4], 0 }
   0x4   :  { %14 = vsyncpa [#allocation4 + $0x1], 0  ;;  %s595_s12 = smov 0   ;;  %s597_s13 = smov 0  }
   0x5   :  { %s599_s14 = smov 0   ;;  %s601_s15 = smov 0  }
   0x6 LB: > { %s130_s18 = sshll.u32 %s739_s1, 4  ;;  %s619_s19 = sadd.s32 4294967295, %s570_s15   ;;  %s570_s15 = sphi %s601_s15, %s751_s15   ;;  %s566_s14 = sphi %s599_s14, %s750_s14   ;;  %s562_s13 = sphi %s597_s13, %s749_s13   ;;  %s558_s12 = sphi %s595_s12, %s748_s12   ;;  %s131_s18 = int_to_ptr.hbm [resolvable:$true] %s130_s18 }
   0x7   : > { %p352_p0 = scmp.ge.s32.totalorder %s570_s15, 1  ;;  %p41_p1 = scmp.eq.s32.totalorder %s619_s19, 0 }
   0x8   : > { %p119_p2 = scmp.lt.s32.totalorder %s570_s15, 3  ;;  %s572_s21 = smov [#allocation5]  }
   0x9   : > { %s132_s22 = sshll.u32 %s572_s21, 4  ;;  %s573_s23 = smov 64   ;;  %s133_s22 = int_to_ptr.vmem [resolvable:$true] %s132_s22 }
   0xa   : > { %p624_p3 = pnand %p352_p0, %p119_p2  ;;  %s574_s24 = smov 4  }
   0xb   : > { %s351_s25 = sadd.s32 4294967294, %s570_s15   ;;  %s635_s26 = sadd.s32 1, %s570_s15  }
   0xc   : > { %p384_p4 = pneg %p624_p3  ;;  %s27_s27 = sadd.s32 1, %s566_s14 }
   0xd   : > { %s24_s28 = ssub.s32 %s570_s15, %s635_s26  ;;  %p34_p7 = scmp.ne.s32.totalorder %s566_s14, %s562_s13 }
   0xe   : > { %p385_p6 = pnand %p384_p4, %p41_p1  ;;  %p25_p8 = scmp.eq.s32.totalorder %s24_s28, 0 }
   0xf   : > { %p35_p9 = scmp.eq.s32.totalorder %s570_s15, 0  ;;  %p40_p10 = scmp.ne.s32.totalorder %s562_s13, %s558_s12 }
  0x10   : > { %387 = dma.hbm_to_vmem [thread:$0]  (!%p385_p6), %s131_s18, 256, %s133_s22, [#allocation6], %s573_s23, %s573_s23, %s574_s24  }
  0x11   : > { %p106_p11 = scmp.eq.s32.totalorder %s619_s19, 1  ;;  %p651_p12 = por %p41_p1, %p40_p10 }
  0x12   : > { %s647_s29 = scalar_select %p25_p8, %s566_s14, %s27_s27  }
  0x13   : > { %p655_p13 = por %p106_p11, %p34_p7  ;;  %p112_p0 = scmp.eq.s32.totalorder %s351_s25, 1 }
  0x14   : > { %p36_p2 = por %p35_p9, %p34_p7  ;;  %s149_s5 = sand.u32 1, %s566_s14  }
  0x15   : > { %p660_p4 = por %p112_p0, %p40_p10  ;;  %p397_p6 = scmp.lt.s32.totalorder %s570_s15, 2 }
  0x16   : > { %s355_s7 = sshll.u32 %s149_s5, 3  ;;  %s356_s8 = sshll.u32 %s570_s15, 3 }
  0x17   : > { %s157_s11 = scalar_lea.hbm %s738_s0, %s356_s8  ;;  %s153_s17 = scalar_lea.vmem [#allocation2], %s355_s7 }
  0x18   : > { %s159_s16 = sshll.u32 %s157_s11, 4  ;;  %s161_s18 = sshll.u32 %s153_s17, 4  ;;  %s160_s16 = int_to_ptr.hbm [resolvable:$true] %s159_s16  ;;  %s162_s18 = int_to_ptr.vmem [resolvable:$true] %s161_s18 }
  0x19   : > { %p669_p8 = pnand %p397_p6, %p36_p2  ;;  %s150_s22 = scalar_lea.sflag [#allocation3], %s149_s5 }
  0x1a   : > { %s470_s23 = sshra.s32 %s160_s16, 4  ;;  %s477_s28 = scalar_lea.hbm %s738_s0, 16  ;;  %s471_s23 = int_to_ptr.hbm [resolvable:$true] %s470_s23 }
  0x1b   : > { %s472_s24 = scalar_lea.hbm %s471_s23, 8  ;;  %p474_p9 = pneg %p669_p8 }
  0x1c   : > { %p473_p7 = scmp.ne.s32.totalorder %s471_s23, %s472_s24  ;;  %p478_p0 = scmp.lt.s32.totalorder %s471_s23, %s738_s0 }
  0x1d   : > { %p479_p2 = scmp.lt.s32.totalorder %s477_s28, %s472_s24 }
  0x1e   : > { %p475_p10 = pnand %p474_p9, %p473_p7 }
  0x1f   : > { %p480_p6 = por %p479_p2, %p478_p0 }
  0x20   : > { %p476_p11 = pneg %p475_p10 }
  0x22   : > { %p481_p5 = pnand %p480_p6, %p476_p11 }
  0x24   : > { %484 = shalt.err (!%p481_p5)
}
  0x25   : > { %391 = dma.hbm_to_vmem [thread:$0]  (!%p669_p8), %s160_s16, 128, %s162_s18, %s150_s22  }
  0x26   : > { %170 = sbr.rel (%p624_p3) target bundleno = 437 (0x1b5), region = 32  ;;  %s686_s5 = sand.u32 (!%p624_p3), 1, %s562_s13  }
  0x27   : > { %s358_s9 = sshll.u32 (!%p624_p3), %s686_s5, 3  ;;  %s173_s10 = scalar_lea.sflag (!%p624_p3), [#allocation3], %s686_s5 }
  0x28   : > { %s176_s11 = scalar_lea.vmem (!%p624_p3), [#allocation2], %s358_s9 }
  0x2b   : > { %545 = dma.done.wait (%p651_p12), %s173_s10, 128  }
  0x2c   : > { %547 = vsyncadd (%p651_p12), %s173_s10, 4294967168 }
  0x2d   : > { %549 = dma.done.wait (%p41_p1), [#allocation6], 256  }
  0x2e   : > { %551 = vsyncadd (%p41_p1), [#allocation6], 4294967040  ;;  %v375_v0 = vld [vmem:[#allocation5 + $0x8] sm:$0xff]  ;;  %v374_v1 = vld [vmem:[#allocation5] sm:$0xff]  ;;  %vm228_vm0 = vcmask 261120   ;;  %s371_s30 = sshll.u32 %s619_s19, 3 }
  0x2f   : > { %238 = vmatpush.bf16.msra.mxu0 %v375_v0  ;;  %v206_v2 = vld [vmem:[%s176_s11] sm:$0xff]  ;;  %s266_s21 = scalar_lea.hbm %s741_s3, %s371_s30  ;;  %s204_s22 = scalar_lea.vmem [#allocation7], %s358_s9 }
  0x30   : > { %v207_v3 = vpack.c.bf16 %v206_v2, %v206_v2  ;;  %v435_v4 = vld [vmem:[%s740_s2] ss:$0 sm:$0xff]  ;;  %s268_s23 = sshll.u32 %s204_s22, 4  ;;  %s270_s24 = sshll.u32 %s266_s21, 4  ;;  %s269_s23 = int_to_ptr.vmem [resolvable:$true] %s268_s23  ;;  %s271_s24 = int_to_ptr.hbm [resolvable:$true] %s270_s24 }
  0x31   : > { %s256_s25 = scalar_lea.sflag [#allocation4], %s686_s5  ;;  %s514_s27 = sshra.s32 %s271_s24, 4  ;;  %s515_s27 = int_to_ptr.hbm [resolvable:$true] %s514_s27 }
  0x32   : > { %s516_s19 = scalar_lea.hbm %s515_s27, 8  ;;  %s520_s8 = scalar_lea.hbm %s741_s3, 16 }
  0x33   : > { %239 = vmatpush.bf16.msra.mxu0 %v374_v1  ;;  %p517_p1 = scmp.ne.s32.totalorder %s515_s27, %s516_s19  ;;  %p521_p12 = scmp.lt.s32.totalorder %s515_s27, %s741_s3 }
  0x34   : > { %p522_p8 = scmp.lt.s32.totalorder %s520_s8, %s516_s19 }
  0x35   : > { %p518_p3 = pnand %p517_p1, %p655_p13 }
  0x36   : > { %369 = vmatmul.msk.bf16.vlgmr.msra.gmra.mxu0 %vm228_vm0, %v207_v3  ;;  %p523_p7 = por %p522_p8, %p521_p12 }
  0x37   : > { %p519_p5 = pneg %p518_p3 }
  0x39   : > { %p524_p9 = pnand %p523_p7, %p519_p5 }
  0xb3   : > { %v241_v5 = vpop.f32.mrf.mxu0 }
  0xb4   : > { %v242_v6 = vadd.f32 %v435_v4, %v241_v5 }
  0xb6   : > { %245 = vmax.xlane.f32.xlu0 %v242_v6 }
  0xbb   : > { %v243_v7 = vpop.f32.mrf.mxu0 }
 0x129   : > { %v246_v8 = vpop.xlane.xlu0 %245 }
 0x12a   : > { %v247_v9 = vsub.f32 %v242_v6, %v246_v8 }
 0x12c   : > { %v248_v10 = vmul.f32 1.442695, %v247_v9 }
 0x12e   : > { %436 = vpow2.f32 %v248_v10 }
 0x134   : > { %v437_v11 = vpop.eup %436 }
 0x135   : > { %250 = vadd.xlane.f32.xlu0 %v437_v11 }
 0x1a8   : > { %v251_v12 = vpop.xlane.xlu0 %250 }
 0x1a9   : > { %438 = vrcp.f32 %v251_v12 }
 0x1af   : > { %v439_v13 = vpop.eup %438 }
 0x1b0   : > { %v253_v14 = vmul.f32 %v439_v13, %v437_v11 }
 0x1b2   : > { %254 = vst [vmem:[%s204_s22] sm:$0xff] %v253_v14 }
 0x1b3   : > { %527 = shalt.err (!%p524_p9)
}
 0x1b4   : > { %382 = dma.vmem_to_hbm [thread:$0]  (%p655_p13), %s269_s23, 128, %s271_s24, %s256_s25  }
 0x1b5 PF: > { %s282_s5 = sand.u32 1, %s558_s12   ;;  %p747_p10 = scmp.ge.s32.totalorder %s570_s15, 2 }
 0x1b6   : > { %s283_s11 = scalar_lea.sflag [#allocation4], %s282_s5 }
 0x1b7   : > { %p393_p11 = pnand %p747_p10, %p660_p4 }
 0x1b9   : > { %p394_p0 = pneg %p393_p11 }
 0x1bb   : > { %553 = dma.done.wait (%p394_p0), %s283_s11, 128  }
 0x1bc   : > { %555 = vsyncadd (%p394_p0), %s283_s11, 4294967168  ;;  %p17_p2 = scmp.ge.s32.totalorder %s635_s26, 4   ;;  %s748_s12 = smov %s562_s13 }
 0x1bd   : > { %s749_s13 = smov %s566_s14  ;;  %s750_s14 = smov %s647_s29 }
 0x1be   : > { %s751_s15 = smov %s635_s26  ;;  %19 = sbr.rel (!%p17_p2) target bundleno = 6 (0x6), region = 81 }
 0x1c3   :  { %289 = vsyncpa [#allocation3], 1 }
 0x1c4   :  { %291 = vsyncpa [#allocation3 + $0x1], 1 }
 0x1c5   :  { %292 = vsyncpa [#allocation6], 1 }
 0x1c6   :  { %293 = vsyncpa [#allocation4], 1 }
 0x1c7   :  { %295 = vsyncpa [#allocation4 + $0x1], 1 }

</bundles_post_ra>
